<compile_context>
chip_gen: v5e
topology: v5e:2x2
jax: 0.10.0
libtpu: 0.0.40
codegen_flags: <defaults>
</compile_context>

<pallas_src>
import jax
import jax.numpy as jnp
import numpy as np
from jax import lax
from jax.experimental import pallas as pl
from jax.experimental.pallas import tpu as pltpu

# ---- small, module-consistent configuration ----
B = 2                       # batch
HEADS = 2                   # heads
DHEAD = 4                   # dim_head
DIM = HEADS * DHEAD         # dim == num channels (8)
INNER = HEADS * DHEAD       # inner_dim (is_ss path => inner_dim == dim)
N = 8                       # num_patches / num_tokens
BN = B * N                  # batch folded into rows
EPS = 1e-5                  # torch.nn.LayerNorm default eps


def prenorm_attention_kernel(x_ref, g_ref, beta_ref, attn_ref, wt_ref,
                             bias_ref, o_ref):
    """Fused PreNorm(LayerNorm) + default-path Attention + output projection.

    x_ref    : (B*N, DIM)         tokens, batch flattened into rows
    g_ref    : (1, DIM)           LayerNorm weight
    beta_ref : (1, DIM)           LayerNorm bias
    attn_ref : (HEADS, B*N, B*N)  block-diagonal (dynamicqk * decay_mask),
                                  replicated on the diagonal per batch element
    wt_ref   : (INNER, DIM)       output projection weight, (in, out) layout
    bias_ref : (1, DIM)           output projection bias
    o_ref    : (B*N, DIM)         output
    """
    x = x_ref[...]                                            # (BN, DIM) f32

    # --- LayerNorm over the channel axis (PreNorm) ---
    mu = jnp.mean(x, axis=-1, keepdims=True)
    xc = x - mu
    var = jnp.mean(xc * xc, axis=-1, keepdims=True)
    xn = xc * lax.rsqrt(var + EPS) * g_ref[...] + beta_ref[...]

    # --- per-head attention mix folded directly into the output projection ---
    # out @ W = sum_h (attn_h @ v_h) @ W[h*D:(h+1)*D, :]  -> no concat needed.
    acc = jnp.zeros((BN, DIM), jnp.float32)
    for h in range(HEADS):
        v_h = xn[:, h * DHEAD:(h + 1) * DHEAD]                # (BN, DHEAD)
        o_h = jnp.dot(attn_ref[h], v_h,
                      preferred_element_type=jnp.float32)     # (BN, DHEAD)
        acc = acc + jnp.dot(o_h, wt_ref[h * DHEAD:(h + 1) * DHEAD, :],
                            preferred_element_type=jnp.float32)

    o_ref[...] = (acc + bias_ref[...]).astype(o_ref.dtype)


def prenorm_attention_forward(x, ln_gamma, ln_beta, dynamicqk, decay_mask,
                              w_t, b_out):
    """x: (B, N, DIM) f32 -> (B, N, DIM) f32."""
    # Batch-invariant precompute, hoisted out of the kernel.
    attn = (dynamicqk * decay_mask)[0]                        # (HEADS, N, N)
    attn_big = jnp.zeros((HEADS, BN, BN), attn.dtype)
    for bb in range(B):                                       # block-diag fold
        attn_big = attn_big.at[:, bb * N:(bb + 1) * N,
                               bb * N:(bb + 1) * N].set(attn)

    x2 = x.reshape(BN, DIM)                                   # layout plumbing

    out2 = pl.pallas_call(
        prenorm_attention_kernel,
        out_shape=jax.ShapeDtypeStruct((BN, DIM), x.dtype),
        grid=(1,),                                            # single step
        in_specs=[
            pl.BlockSpec((BN, DIM), lambda i: (0, 0)),        # x
            pl.BlockSpec((1, DIM), lambda i: (0, 0)),         # LN weight
            pl.BlockSpec((1, DIM), lambda i: (0, 0)),         # LN bias
            pl.BlockSpec((HEADS, BN, BN), lambda i: (0, 0, 0)),  # attn (blkdiag)
            pl.BlockSpec((INNER, DIM), lambda i: (0, 0)),     # W (in,out)
            pl.BlockSpec((1, DIM), lambda i: (0, 0)),         # bias
        ],
        out_specs=pl.BlockSpec((BN, DIM), lambda i: (0, 0)),
        compiler_params=pltpu.CompilerParams(
            dimension_semantics=("arbitrary",)),
    )(x2, ln_gamma, ln_beta, attn_big, w_t, b_out)

    return out2.reshape(B, N, DIM)


def reference_forward(x, ln_gamma, ln_beta, dynamicqk, decay_mask, w_t, b_out):
    """Pure-JAX reference mirroring PyTorch PreNorm(LayerNorm) + Attention."""
    mu = x.mean(-1, keepdims=True)
    var = ((x - mu) ** 2).mean(-1, keepdims=True)
    xn = (x - mu) / jnp.sqrt(var + EPS) * ln_gamma[0] + ln_beta[0]

    b, n, _ = x.shape
    v = xn.reshape(b, n, HEADS, DHEAD).transpose(0, 2, 1, 3)   # (B, H, N, D)
    attn = dynamicqk * decay_mask                              # (1, H, N, N)
    attn_b = jnp.broadcast_to(attn, (b, HEADS, N, N))
    out = jnp.einsum('bhij,bhjd->bhid', attn_b, v)
    out = out.transpose(0, 2, 1, 3).reshape(b, n, INNER)       # 'b n (h d)'
    return out @ w_t + b_out[0]


if __name__ == "__main__":
    key = jax.random.PRNGKey(0)
    k_x, k_qk, k_w, k_g, k_b = jax.random.split(key, 5)

    # Input (B, N, DIM)
    x = jax.random.normal(k_x, (B, N, DIM), dtype=jnp.float32)

    # LayerNorm affine params (torch init is ones/zeros; perturbed here so the
    # affine path is actually exercised), stored in kernel (1, DIM) layout.
    ln_gamma = (1.0 + 0.1 * jax.random.normal(k_g, (1, DIM))).astype(jnp.float32)
    ln_beta = (0.05 * jax.random.normal(k_b, (1, DIM))).astype(jnp.float32)

    # Attention parameters (shapes per Attention.__init__); the module
    # zero-inits dynamicqk, here it is random so the compute is non-trivial.
    dynamicqk = 0.1 * jax.random.normal(k_qk, (1, 1, N, N), dtype=jnp.float32)

    # Decay mask (the `mask` ctor arg): per-head exponential distance decay.
    gammas = jnp.array([0.9, 0.7], dtype=jnp.float32)                  # (H,)
    idx = jnp.arange(N, dtype=jnp.float32)
    dist = jnp.abs(idx[:, None] - idx[None, :])                        # (N, N)
    decay_mask = (gammas[:, None, None] ** dist)[None]                 # (1,H,N,N)

    # to_out Linear(inner_dim, dim): weight stored directly in (in, out)
    # layout so no per-call transpose is needed; zero bias in (1, DIM) layout.
    xav_std = float(np.sqrt(2.0 / (INNER + DIM)))
    w_t = xav_std * jax.random.normal(k_w, (INNER, DIM), dtype=jnp.float32)
    b_out = jnp.zeros((1, DIM), dtype=jnp.float32)

    out = prenorm_attention_forward(x, ln_gamma, ln_beta, dynamicqk,
                                    decay_mask, w_t, b_out)
    out = jax.block_until_ready(out)

    ref = reference_forward(x, ln_gamma, ln_beta, dynamicqk, decay_mask,
                            w_t, b_out)
    np.testing.assert_allclose(np.asarray(out), np.asarray(ref),
                               rtol=1e-5, atol=1e-5)
    print("KERNEL_OK")
</pallas_src>

<mosaic_0001>
module attributes {stable_mosaic.version = 11 : i64} {
  func.func @prenorm_attention_kernel(%arg0: i32, %arg1: memref<16x8xf32, #tpu.memory_space<vmem>>, %arg2: memref<1x8xf32, #tpu.memory_space<vmem>>, %arg3: memref<1x8xf32, #tpu.memory_space<vmem>>, %arg4: memref<2x16x16xf32, #tpu.memory_space<vmem>>, %arg5: memref<8x8xf32, #tpu.memory_space<vmem>>, %arg6: memref<1x8xf32, #tpu.memory_space<vmem>>, %arg7: memref<16x8xf32, #tpu.memory_space<vmem>>) attributes {dimension_semantics = [#tpu.dimension_semantics<arbitrary>], iteration_bounds = array<i64: 1>, scalar_prefetch = 0 : i64, scratch_operands = 0 : i64, tpu.core_type = #tpu.core_type<tc>, window_params = [{pipeline_mode = #tpu.pipeline_mode<synchronous>, transform_indices = @transform_0, window_bounds = array<i64: 16, 8>}, {pipeline_mode = #tpu.pipeline_mode<synchronous>, transform_indices = @transform_1, window_bounds = array<i64: 1, 8>}, {pipeline_mode = #tpu.pipeline_mode<synchronous>, transform_indices = @transform_2, window_bounds = array<i64: 1, 8>}, {pipeline_mode = #tpu.pipeline_mode<synchronous>, transform_indices = @transform_3, window_bounds = array<i64: 2, 16, 16>}, {pipeline_mode = #tpu.pipeline_mode<synchronous>, transform_indices = @transform_4, window_bounds = array<i64: 8, 8>}, {pipeline_mode = #tpu.pipeline_mode<synchronous>, transform_indices = @transform_5, window_bounds = array<i64: 1, 8>}, {pipeline_mode = #tpu.pipeline_mode<synchronous>, transform_indices = @transform_6, window_bounds = array<i64: 16, 8>}]} {
    %c0 = arith.constant 0 : index
    %c0_0 = arith.constant 0 : index
    %0 = vector.load %arg1[%c0, %c0_0] : memref<16x8xf32, #tpu.memory_space<vmem>>, vector<16x8xf32>
    %cst = arith.constant dense<0.000000e+00> : vector<16xf32>
    %1 = vector.multi_reduction <add>, %0, %cst [1] : vector<16x8xf32> to vector<16xf32>
    %2 = vector.shape_cast %1 : vector<16xf32> to vector<16x1xf32>
    %cst_1 = arith.constant 8.000000e+00 : f32
    %3 = vector.broadcast %cst_1 : f32 to vector<16x1xf32>
    %4 = arith.divf %2, %3 : vector<16x1xf32>
    %5 = vector.broadcast %4 : vector<16x1xf32> to vector<16x8xf32>
    %6 = arith.subf %0, %5 : vector<16x8xf32>
    %7 = arith.mulf %6, %6 : vector<16x8xf32>
    %cst_2 = arith.constant dense<0.000000e+00> : vector<16xf32>
    %8 = vector.multi_reduction <add>, %7, %cst_2 [1] : vector<16x8xf32> to vector<16xf32>
    %9 = vector.shape_cast %8 : vector<16xf32> to vector<16x1xf32>
    %cst_3 = arith.constant 8.000000e+00 : f32
    %10 = vector.broadcast %cst_3 : f32 to vector<16x1xf32>
    %11 = arith.divf %9, %10 : vector<16x1xf32>
    %cst_4 = arith.constant 9.99999974E-6 : f32
    %12 = vector.broadcast %cst_4 : f32 to vector<16x1xf32>
    %13 = arith.addf %11, %12 : vector<16x1xf32>
    %14 = math.rsqrt %13 : vector<16x1xf32>
    %15 = vector.broadcast %14 : vector<16x1xf32> to vector<16x8xf32>
    %16 = arith.mulf %6, %15 : vector<16x8xf32>
    %c0_5 = arith.constant 0 : index
    %c0_6 = arith.constant 0 : index
    %17 = vector.load %arg2[%c0_5, %c0_6] : memref<1x8xf32, #tpu.memory_space<vmem>>, vector<1x8xf32>
    %18 = vector.broadcast %17 : vector<1x8xf32> to vector<16x8xf32>
    %19 = arith.mulf %16, %18 : vector<16x8xf32>
    %c0_7 = arith.constant 0 : index
    %c0_8 = arith.constant 0 : index
    %20 = vector.load %arg3[%c0_7, %c0_8] : memref<1x8xf32, #tpu.memory_space<vmem>>, vector<1x8xf32>
    %21 = vector.broadcast %20 : vector<1x8xf32> to vector<16x8xf32>
    %22 = arith.addf %19, %21 : vector<16x8xf32>
    %cst_9 = arith.constant 0.000000e+00 : f32
    %23 = vector.broadcast %cst_9 : f32 to vector<16x8xf32>
    %24 = vector.extract_strided_slice %22 {offsets = [0, 0], sizes = [16, 4], strides = [1, 1]} : vector<16x8xf32> to vector<16x4xf32>
    %c0_10 = arith.constant 0 : index
    %c0_11 = arith.constant 0 : index
    %c0_12 = arith.constant 0 : index
    %25 = vector.load %arg4[%c0_10, %c0_11, %c0_12] : memref<2x16x16xf32, #tpu.memory_space<vmem>>, vector<1x16x16xf32>
    %26 = vector.shape_cast %25 : vector<1x16x16xf32> to vector<16x16xf32>
    %cst_13 = arith.constant dense<0.000000e+00> : vector<16x4xf32>
    %27 = tpu.matmul %26, %24, %cst_13 {dimension_numbers = #tpu.dot_dimension_numbers<[1], [0], [0], [1], [0, 0, 1, 1], [], []>} : vector<16x16xf32>, vector<16x4xf32>, vector<16x4xf32> -> vector<16x4xf32>
    %c0_14 = arith.constant 0 : index
    %c0_15 = arith.constant 0 : index
    %28 = vector.load %arg5[%c0_14, %c0_15] : memref<8x8xf32, #tpu.memory_space<vmem>>, vector<4x8xf32>
    %cst_16 = arith.constant dense<0.000000e+00> : vector<16x8xf32>
    %29 = tpu.matmul %27, %28, %cst_16 {dimension_numbers = #tpu.dot_dimension_numbers<[1], [0], [0], [1], [0, 0, 1, 1], [], []>} : vector<16x4xf32>, vector<4x8xf32>, vector<16x8xf32> -> vector<16x8xf32>
    %30 = arith.addf %23, %29 : vector<16x8xf32>
    %31 = vector.extract_strided_slice %22 {offsets = [0, 4], sizes = [16, 4], strides = [1, 1]} : vector<16x8xf32> to vector<16x4xf32>
    %c1 = arith.constant 1 : index
    %c0_17 = arith.constant 0 : index
    %c0_18 = arith.constant 0 : index
    %32 = vector.load %arg4[%c1, %c0_17, %c0_18] : memref<2x16x16xf32, #tpu.memory_space<vmem>>, vector<1x16x16xf32>
    %33 = vector.shape_cast %32 : vector<1x16x16xf32> to vector<16x16xf32>
    %cst_19 = arith.constant dense<0.000000e+00> : vector<16x4xf32>
    %34 = tpu.matmul %33, %31, %cst_19 {dimension_numbers = #tpu.dot_dimension_numbers<[1], [0], [0], [1], [0, 0, 1, 1], [], []>} : vector<16x16xf32>, vector<16x4xf32>, vector<16x4xf32> -> vector<16x4xf32>
    %c4 = arith.constant 4 : index
    %c0_20 = arith.constant 0 : index
    %35 = vector.load %arg5[%c4, %c0_20] : memref<8x8xf32, #tpu.memory_space<vmem>>, vector<4x8xf32>
    %cst_21 = arith.constant dense<0.000000e+00> : vector<16x8xf32>
    %36 = tpu.matmul %34, %35, %cst_21 {dimension_numbers = #tpu.dot_dimension_numbers<[1], [0], [0], [1], [0, 0, 1, 1], [], []>} : vector<16x4xf32>, vector<4x8xf32>, vector<16x8xf32> -> vector<16x8xf32>
    %37 = arith.addf %30, %36 : vector<16x8xf32>
    %c0_22 = arith.constant 0 : index
    %c0_23 = arith.constant 0 : index
    %38 = vector.load %arg6[%c0_22, %c0_23] : memref<1x8xf32, #tpu.memory_space<vmem>>, vector<1x8xf32>
    %39 = vector.broadcast %38 : vector<1x8xf32> to vector<16x8xf32>
    %40 = arith.addf %37, %39 : vector<16x8xf32>
    %c0_24 = arith.constant 0 : index
    %c0_25 = arith.constant 0 : index
    %41 = vector.load %arg7[%c0_24, %c0_25] : memref<16x8xf32, #tpu.memory_space<vmem>>, vector<16x8xf32>
    tpu.vector_store %arg7[%c0_24, %c0_25], %40 {strides = array<i32>} : memref<16x8xf32, #tpu.memory_space<vmem>>, vector<16x8xf32>,
    return
  }
  func.func @transform_0(%arg0: i32) -> (i32, i32) {
    %c0_i32 = arith.constant 0 : i32
    %c0_i32_0 = arith.constant 0 : i32
    %c0_i32_1 = arith.constant 0 : i32
    return %c0_i32, %c0_i32_0 : i32, i32
  }
  func.func @transform_1(%arg0: i32) -> (i32, i32) {
    %c0_i32 = arith.constant 0 : i32
    %c0_i32_0 = arith.constant 0 : i32
    %c0_i32_1 = arith.constant 0 : i32
    return %c0_i32, %c0_i32_0 : i32, i32
  }
  func.func @transform_2(%arg0: i32) -> (i32, i32) {
    %c0_i32 = arith.constant 0 : i32
    %c0_i32_0 = arith.constant 0 : i32
    %c0_i32_1 = arith.constant 0 : i32
    return %c0_i32, %c0_i32_0 : i32, i32
  }
  func.func @transform_3(%arg0: i32) -> (i32, i32, i32) {
    %c0_i32 = arith.constant 0 : i32
    %c0_i32_0 = arith.constant 0 : i32
    %c0_i32_1 = arith.constant 0 : i32
    %c0_i32_2 = arith.constant 0 : i32
    return %c0_i32, %c0_i32_0, %c0_i32_1 : i32, i32, i32
  }
  func.func @transform_4(%arg0: i32) -> (i32, i32) {
    %c0_i32 = arith.constant 0 : i32
    %c0_i32_0 = arith.constant 0 : i32
    %c0_i32_1 = arith.constant 0 : i32
    return %c0_i32, %c0_i32_0 : i32, i32
  }
  func.func @transform_5(%arg0: i32) -> (i32, i32) {
    %c0_i32 = arith.constant 0 : i32
    %c0_i32_0 = arith.constant 0 : i32
    %c0_i32_1 = arith.constant 0 : i32
    return %c0_i32, %c0_i32_0 : i32, i32
  }
  func.func @transform_6(%arg0: i32) -> (i32, i32) {
    %c0_i32 = arith.constant 0 : i32
    %c0_i32_0 = arith.constant 0 : i32
    %c0_i32_1 = arith.constant 0 : i32
    return %c0_i32, %c0_i32_0 : i32, i32
  }
}

</mosaic_0001>

<bundles_post_ra>
// kernel: tpu_custom_call.1
= control target key start
LH: loop header
LB: loop body
LE: loop exit
PB: predicated region body
PF: predicated region fallthrough
CT: control target
= control target key end

     0   :  { %11 = vsyncpa [#allocation3], 0  ;;  %s313_s24 = smov [#allocation2]   ;;  %s314_s26 = smov 128   ;;  %s389_s0 = inlined_call_operand.vmem [shape: f32[16,8], index: 0, kind: input, shape index: {}]   ;;  %s390_s1 = inlined_call_operand.vmem [shape: f32[1,8], index: 1, kind: input, shape index: {}]   ;;  %s391_s2 = inlined_call_operand.vmem [shape: f32[1,8], index: 2, kind: input, shape index: {}]   ;;  %s392_s3 = inlined_call_operand.hbm [shape: f32[2,16,16], index: 3, kind: input, shape index: {}]   ;;  %s393_s4 = inlined_call_operand.vmem [shape: f32[8,8], index: 4, kind: input, shape index: {}]   ;;  %s394_s5 = inlined_call_operand.vmem [shape: f32[1,8], index: 5, kind: input, shape index: {}]   ;;  %s395_s6 = inlined_call_operand.vmem [shape: f32[16,8], index: 6, kind: output, shape index: {}]  }
   0x1   :  { %s22_s23 = sshll.u32 %s392_s3, 4  ;;  %s24_s25 = sshll.u32 %s313_s24, 4  ;;  %s23_s23 = int_to_ptr.hbm [resolvable:$true] %s22_s23  ;;  %s25_s25 = int_to_ptr.vmem [resolvable:$true] %s24_s25 }
   0x2   :  { %s315_s27 = smov 8  }
   0x3   :  { %30 = dma.hbm_to_vmem [thread:$0]  %s23_s23, 512, %s25_s25, [#allocation3], %s314_s26, %s314_s26, %s315_s27  }
   0x4   :  { %311 = dma.done.wait [#allocation3], 512  }
   0x5   :  { %312 = vsyncadd [#allocation3], 4294966784  ;;  %vm41_vm0 = vcmask 64512   ;;  %v40_v0 = vld [vmem:[%s389_s0 + $0x8] sm:$0xff]  ;;  %v39_v2 = vld [vmem:[%s389_s0] sm:$0xff]  ;;  %v316_v4 = vmov 8.0  }
   0x6   :  { %v45_v1 = vsel %vm41_vm0, %v40_v0, 0.0  ;;  %v42_v3 = vsel %vm41_vm0, %v39_v2, 0.0  ;;  %281 = vrcp.f32 %v316_v4  ;;  %v278_v35 = vld [vmem:[%s390_s1] ss:$0 sm:$0xff]  ;;  %s317_s1 = smov 124   ;;  %vm107_vm8 = vcmask 130048  }
   0x7   :  { %46 = vadd.xlane.f32.xlu0 %v45_v1  ;;  %v279_v39 = vld [vmem:[%s391_s2] ss:$0 sm:$0xff]  ;;  %v106_v51 = vld [vmem:[#allocation2 + $0x8] sm:$0xff]  ;;  %v139_v55 = vld [vmem:[#allocation2 + $0x10] sm:$0xff]  ;;  %vm186_vm9 = vcmask 1043456   ;;  %vm179_vm10 = vcmask 31744  }
   0x8   :  { %v105_v50 = vld [vmem:[#allocation2] sm:$0xff]  ;;  %v140_v56 = vld [vmem:[#allocation2 + $0x18] sm:$0xff] }
   0x9   :  { %v178_v57 = vld [vmem:[%s393_s4 + $0x4] sm:$0xf]  ;;  %v137_v58 = vld [vmem:[%s393_s4] sm:$0xf] }
   0xa   :  { %262 = vmatpush.msk.msra.mxu2 %vm186_vm9, %v178_v57  ;;  %265 = vmatpush.msk.msra.mxu3 %vm186_vm9, %v137_v58 }
   0xc   :  { %v282_v5 = vpop.eup %281 }
   0xd   :  { %v49_v6 = vmul.f32 8.0, %v282_v5  ;;  %vm53_vm1 = vweird.f32 %v282_v5 }
   0xf   :  { %43 = vadd.xlane.f32.xlu0 %v42_v3  ;;  %v50_v7 = vsub.f32 1.0, %v49_v6 }
  0x11   :  { %v51_v8 = vmul.f32 %v282_v5, %v50_v7 }
  0x13   :  { %v52_v9 = vadd.f32 %v282_v5, %v51_v8 }
  0x15   :  { %v54_v10 = vsel %vm53_vm1, %v282_v5, %v52_v9 }
  0x7a   :  { %v47_v11 = vpop.xlane.xlu0 %46 }
  0x7b   :  { %v56_v12 = vmul.f32 %v54_v10, %v47_v11 }
  0x7d   :  { %v58_v13 = vsub.f32 %v40_v0, %v56_v12  ;;  %v280_v0 = vld [vmem:[%s394_s5] ss:$0 sm:$0xff] }
  0x7f   :  { %v60_v14 = vmul.f32 %v58_v13, %v58_v13 }
  0x81   :  { %v64_v15 = vsel %vm41_vm0, %v60_v14, 0.0 }
  0x82   :  { %65 = vadd.xlane.f32.xlu1 %v64_v15  ;;  %v44_v16 = vpop.xlane.xlu0 %43 }
  0x83   :  { %v55_v17 = vmul.f32 %v54_v10, %v44_v16 }
  0x85   :  { %v57_v18 = vsub.f32 %v39_v2, %v55_v17 }
  0x87   :  { %v59_v19 = vmul.f32 %v57_v18, %v57_v18 }
  0x89   :  { %v61_v20 = vsel %vm41_vm0, %v59_v19, 0.0 }
  0x8a   :  { %62 = vadd.xlane.f32.xlu1 %v61_v20 }
  0xf5   :  { %v66_v21 = vpop.xlane.xlu1 %65 }
  0xf6   :  { %v68_v22 = vmul.f32 %v66_v21, %v54_v10 }
  0xf8   :  { %v70_v23 = vadd.f32 1e-05, %v68_v22 }
  0xfa   :  { %283 = vrsqrt.f32 %v70_v23  ;;  %vm87_vm3 = vweird.f32 %v70_v23 }
  0xfd   :  { %v63_v24 = vpop.xlane.xlu1 %62 }
  0xfe   :  { %v67_v25 = vmul.f32 %v63_v24, %v54_v10 }
 0x100   :  { %v284_v26 = vpop.eup %283  ;;  %v69_v27 = vadd.f32 1e-05, %v67_v25 }
 0x101   :  { %v82_v28 = vmul.f32 %v284_v26, %v70_v23  ;;  %vm88_vm2 = vweird.f32 %v284_v26 }
 0x102   :  { %285 = vrsqrt.f32 %v69_v27  ;;  %vm89_vm4 = vmor %vm87_vm3, %vm88_vm2  ;;  %vm77_vm6 = vweird.f32 %v69_v27 }
 0x103   :  { %v83_v29 = vmul.f32 %v284_v26, %v82_v28 }
 0x105   :  { %v84_v30 = vmul.f32 0.5, %v83_v29 }
 0x107   :  { %v85_v31 = vsub.f32 1.5, %v84_v30 }
 0x108   :  { %v286_v32 = vpop.eup %285 }
 0x109   :  { %v86_v33 = vmul.f32 %v284_v26, %v85_v31  ;;  %v72_v34 = vmul.f32 %v286_v32, %v69_v27  ;;  %vm78_vm5 = vweird.f32 %v286_v32 }
 0x10a   :  { %vm79_vm7 = vmor %vm77_vm6, %vm78_vm5 }
 0x10b   :  { %v73_v36 = vmul.f32 %v286_v32, %v72_v34  ;;  %v90_v37 = vsel %vm89_vm4, %v284_v26, %v86_v33 }
 0x10c   :  { %v92_v38 = vmul.f32 %v90_v37, %v58_v13 }
 0x10d   :  { %v74_v40 = vmul.f32 0.5, %v73_v36 }
 0x10e   :  { %v98_v41 = vmul.f32 %v278_v35, %v92_v38 }
 0x10f   :  { %v75_v42 = vsub.f32 1.5, %v74_v40 }
 0x110   :  { %v104_v43 = vadd.f32 %v279_v39, %v98_v41 }
 0x111   :  { %v76_v44 = vmul.f32 %v286_v32, %v75_v42 }
 0x112   :  { %128 = vmatpush.msra.mxu0 %v104_v43 }
 0x113   :  { %v80_v45 = vsel %vm79_vm7, %v286_v32, %v76_v44 }
 0x114   :  { %v91_v46 = vmul.f32 %v80_v45, %v57_v18 }
 0x116   :  { %v97_v47 = vmul.f32 %v278_v35, %v91_v46 }
 0x118   :  { %v103_v48 = vadd.f32 %v279_v39, %v97_v47 }
 0x11a   :  { %129 = vmatpush.msra.mxu0 %v103_v48  ;;  %v273_v49 = vpack.i.bf16 %v103_v48, %v104_v43 }
 0x11b   :  { %258 = vmatmul.msk.f32.vlgmr.msra.gmra.mxu0 %vm107_vm8, %v105_v50 }
 0x11c   :  { %274 = vrot.lane.b32.xlu2 %v273_v49, %s317_s1 }
 0x123   :  { %259 = vmatmul.msk.f32.gmra.mxu0 %vm107_vm8, %v106_v51 }
 0x176   :  { %v275_v52 = vpop.permute.xlu2 %274 }
 0x177   :  { %v276_v53 = vunpack.i.l.bf16 %v275_v52  ;;  %v277_v54 = vunpack.i.h.bf16 %v275_v52 }
 0x179   :  { %169 = vmatpush.msra.mxu1 %v276_v53 }
 0x17b   :  { %170 = vmatpush.msra.mxu1 %v277_v54 }
 0x17c   :  { %260 = vmatmul.msk.f32.vlgmr.msra.gmra.mxu1 %vm107_vm8, %v139_v55 }
 0x184   :  { %261 = vmatmul.msk.f32.gmra.mxu1 %vm107_vm8, %v140_v56 }
 0x198   :  { %v131_v59 = vpop.f32.mrf.mxu0 }
 0x199   :  { %266 = vmatmul.msk.f32.vlgmr.msra.gmra.mxu3 %vm179_vm10, %v131_v59 }
 0x1a0   :  { %v134_v60 = vpop.f32.mrf.mxu0 }
 0x1a1   :  { %267 = vmatmul.msk.f32.gmra.mxu3 %vm179_vm10, %v134_v60 }
 0x1f9   :  { %v172_v61 = vpop.f32.mrf.mxu1 }
 0x1fa   :  { %263 = vmatmul.msk.f32.vlgmr.msra.gmra.mxu2 %vm179_vm10, %v172_v61 }
 0x201   :  { %v175_v62 = vpop.f32.mrf.mxu1 }
 0x202   :  { %264 = vmatmul.msk.f32.gmra.mxu2 %vm179_vm10, %v175_v62 }
 0x21c   :  { %v239_v63 = vpop.f32.mrf.mxu3 }
 0x224   :  { %v242_v4 = vpop.f32.mrf.mxu3 }
 0x27d   :  { %v207_v1 = vpop.f32.mrf.mxu2 }
 0x27e   :  { %v240_v2 = vadd.f32 %v239_v63, %v207_v1 }
 0x280   :  { %v249_v3 = vadd.f32 %v280_v0, %v240_v2 }
 0x282   :  { %251 = vst.msk [vmem:[%s395_s6] sm:$0xff] %vm41_vm0, %v249_v3 }
 0x285   :  { %v210_v5 = vpop.f32.mrf.mxu2 }
 0x286   :  { %v243_v6 = vadd.f32 %v242_v4, %v210_v5 }
 0x288   :  { %v250_v7 = vadd.f32 %v280_v0, %v243_v6 }
 0x28a   :  { %252 = vst.msk [vmem:[%s395_s6 + $0x8] sm:$0xff] %vm41_vm0, %v250_v7 }
 0x28b   :  { %257 = vsyncpa [#allocation3], 1 }

</bundles_post_ra>
